<compile_context>
chip_gen: v7x
topology: tpu7x:2x2x1
jax: 0.10.0
libtpu: 0.0.40
codegen_flags: <defaults>
</compile_context>

<pallas_src>
import functools

import jax
import jax.numpy as jnp
from jax.experimental import pallas as pl
from jax.experimental.pallas import tpu as pltpu


# --------------------------------------------------------------------------
# tiling helper
# --------------------------------------------------------------------------

def _pick_tile(dim, cap, align):
    """Largest tile <= cap that divides `dim` and is a multiple of `align`.

    Falls back to the full dimension (a block equal to the full array dim always
    satisfies Mosaic's (8,128) rule).  Caps are sized so the double-buffered
    working set stays well inside v7x's 64 MiB VMEM while still feeding
    256-wide MXU tiles on v6e/v7x (128-multiples on v5e).
    """
    if dim <= cap:
        return dim
    t = (cap // align) * align
    while t >= align:
        if dim % t == 0:
            return t
        t -= align
    return dim


_MM_SEMANTICS = ("parallel", "parallel", "arbitrary")


# --------------------------------------------------------------------------
# tiled matmul kernels (K-axis accumulation in f32 VMEM scratch)
# --------------------------------------------------------------------------

def _matmul_kernel(x_ref, w_ref, o_ref, acc_ref):
    @pl.when(pl.program_id(2) == 0)
    def _():
        acc_ref[...] = jnp.zeros_like(acc_ref)

    acc_ref[...] += jnp.dot(x_ref[...], w_ref[...],
                            preferred_element_type=jnp.float32)

    @pl.when(pl.program_id(2) == pl.num_programs(2) - 1)
    def _():
        o_ref[...] = acc_ref[...].astype(o_ref.dtype)


def _matmul_bias_kernel(x_ref, w_ref, b_ref, o_ref, acc_ref):
    @pl.when(pl.program_id(2) == 0)
    def _():
        acc_ref[...] = jnp.zeros_like(acc_ref)

    acc_ref[...] += jnp.dot(x_ref[...], w_ref[...],
                            preferred_element_type=jnp.float32)

    @pl.when(pl.program_id(2) == pl.num_programs(2) - 1)
    def _():
        o_ref[...] = (acc_ref[...] + b_ref[...].astype(jnp.float32)).astype(o_ref.dtype)


def _swiglu_matmul_kernel(g_ref, u_ref, w_ref, o_ref, acc_ref):
    # down_proj with SiLU(gate) * up fused into the LHS tile: the [T, I]
    # activation never makes an extra HBM round trip.
    @pl.when(pl.program_id(2) == 0)
    def _():
        acc_ref[...] = jnp.zeros_like(acc_ref)

    g = g_ref[...].astype(jnp.float32)
    u = u_ref[...].astype(jnp.float32)
    x = (g * (1.0 / (1.0 + jnp.exp(-g))) * u).astype(g_ref.dtype)
    acc_ref[...] += jnp.dot(x, w_ref[...], preferred_element_type=jnp.float32)

    @pl.when(pl.program_id(2) == pl.num_programs(2) - 1)
    def _():
        o_ref[...] = acc_ref[...].astype(o_ref.dtype)


def linear(x, w, b=None, *, tm_cap=256, tn_cap=256, tk_cap=512):
    """x: [M, K]; w: [K, N] (pre-transposed at load time); b: [N]/[1,N] or None."""
    M, K = x.shape
    N = w.shape[1]
    tm = _pick_tile(M, tm_cap, 8)
    tn = _pick_tile(N, tn_cap, 128)
    tk = _pick_tile(K, tk_cap, 128)
    grid = (M // tm, N // tn, K // tk)
    x_spec = pl.BlockSpec((tm, tk), lambda i, j, k: (i, k))
    w_spec = pl.BlockSpec((tk, tn), lambda i, j, k: (k, j))
    o_spec = pl.BlockSpec((tm, tn), lambda i, j, k: (i, j))
    cp = pltpu.CompilerParams(dimension_semantics=_MM_SEMANTICS)
    if b is None:
        return pl.pallas_call(
            _matmul_kernel,
            out_shape=jax.ShapeDtypeStruct((M, N), x.dtype),
            grid_spec=pltpu.PrefetchScalarGridSpec(
                num_scalar_prefetch=0, grid=grid,
                in_specs=[x_spec, w_spec], out_specs=o_spec,
                scratch_shapes=[pltpu.VMEM((tm, tn), jnp.float32)]),
            compiler_params=cp,
        )(x, w)
    b_spec = pl.BlockSpec((1, tn), lambda i, j, k: (0, j))
    return pl.pallas_call(
        _matmul_bias_kernel,
        out_shape=jax.ShapeDtypeStruct((M, N), x.dtype),
        grid_spec=pltpu.PrefetchScalarGridSpec(
            num_scalar_prefetch=0, grid=grid,
            in_specs=[x_spec, w_spec, b_spec], out_specs=o_spec,
            scratch_shapes=[pltpu.VMEM((tm, tn), jnp.float32)]),
        compiler_params=cp,
    )(x, w, b.reshape(1, N))


def swiglu_linear(gu, w, *, tm_cap=256, tn_cap=256, tk_cap=512):
    """gu: [M, 2I] laid out as [gate | up]; w: [I, N].  Computes (silu(gate)*up) @ w."""
    M, K2 = gu.shape
    I = K2 // 2
    N = w.shape[1]
    tm = _pick_tile(M, tm_cap, 8)
    tn = _pick_tile(N, tn_cap, 128)
    tk = _pick_tile(I, tk_cap, 128)
    nkb = I // tk
    grid = (M // tm, N // tn, nkb)
    g_spec = pl.BlockSpec((tm, tk), lambda i, j, k: (i, k))
    u_spec = pl.BlockSpec((tm, tk), lambda i, j, k: (i, k + nkb))   # up half of gu
    w_spec = pl.BlockSpec((tk, tn), lambda i, j, k: (k, j))
    o_spec = pl.BlockSpec((tm, tn), lambda i, j, k: (i, j))
    return pl.pallas_call(
        _swiglu_matmul_kernel,
        out_shape=jax.ShapeDtypeStruct((M, N), gu.dtype),
        grid_spec=pltpu.PrefetchScalarGridSpec(
            num_scalar_prefetch=0, grid=grid,
            in_specs=[g_spec, u_spec, w_spec], out_specs=o_spec,
            scratch_shapes=[pltpu.VMEM((tm, tn), jnp.float32)]),
        compiler_params=pltpu.CompilerParams(dimension_semantics=_MM_SEMANTICS),
    )(gu, gu, w)


# --------------------------------------------------------------------------
# RMSNorm kernels (row-tiled; residual add fused in the `add_rmsnorm` variant)
# --------------------------------------------------------------------------

def _rmsnorm_kernel(x_ref, w_ref, o_ref, *, eps):
    x = x_ref[...].astype(jnp.float32)
    var = jnp.mean(x * x, axis=-1, keepdims=True)
    o_ref[...] = (x * jax.lax.rsqrt(var + eps)
                  * w_ref[...].astype(jnp.float32)).astype(o_ref.dtype)


def rmsnorm(x, w, eps=1e-6, *, tm_cap=256):
    T, H = x.shape
    tm = _pick_tile(T, tm_cap, 8)
    return pl.pallas_call(
        functools.partial(_rmsnorm_kernel, eps=eps),
        out_shape=jax.ShapeDtypeStruct((T, H), x.dtype),
        grid=(T // tm,),
        in_specs=[pl.BlockSpec((tm, H), lambda i: (i, 0)),
                  pl.BlockSpec((1, H), lambda i: (0, 0))],
        out_specs=pl.BlockSpec((tm, H), lambda i: (i, 0)),
        compiler_params=pltpu.CompilerParams(dimension_semantics=("parallel",)),
    )(x, w.reshape(1, H))


def _add_rmsnorm_kernel(x_ref, r_ref, w_ref, y_ref, res_ref, *, eps):
    s = x_ref[...].astype(jnp.float32) + r_ref[...].astype(jnp.float32)
    res_ref[...] = s.astype(res_ref.dtype)
    var = jnp.mean(s * s, axis=-1, keepdims=True)
    y_ref[...] = (s * jax.lax.rsqrt(var + eps)
                  * w_ref[...].astype(jnp.float32)).astype(y_ref.dtype)


def add_rmsnorm(x, r, w, eps=1e-6, *, tm_cap=256):
    """Fused residual add + RMSNorm.  Returns (rmsnorm(x + r) * w, x + r)."""
    T, H = x.shape
    tm = _pick_tile(T, tm_cap, 8)
    blk = pl.BlockSpec((tm, H), lambda i: (i, 0))
    return pl.pallas_call(
        functools.partial(_add_rmsnorm_kernel, eps=eps),
        out_shape=(jax.ShapeDtypeStruct((T, H), x.dtype),
                   jax.ShapeDtypeStruct((T, H), x.dtype)),
        grid=(T // tm,),
        in_specs=[blk, blk, pl.BlockSpec((1, H), lambda i: (0, 0))],
        out_specs=(blk, blk),
        compiler_params=pltpu.CompilerParams(dimension_semantics=("parallel",)),
    )(x, r, w.reshape(1, H))


# --------------------------------------------------------------------------
# flash attention (online softmax, causal + same-sequence mask, GQA dedup)
# --------------------------------------------------------------------------

def _flash_attn_kernel(q_ref, k_ref, v_ref, ss_ref, o_ref, m_sc, l_sc, acc_sc,
                       *, scale, tq, tk, groups):
    iq = pl.program_id(1)
    ik = pl.program_id(2)

    @pl.when(ik == 0)
    def _():
        m_sc[...] = jnp.full_like(m_sc, -1e30)
        l_sc[...] = jnp.zeros_like(l_sc)
        acc_sc[...] = jnp.zeros_like(acc_sc)

    # causal block skip: only kv blocks whose start can be attended by this q block.
    @pl.when(ik * tk <= iq * tq + (tq - 1))
    def _():
        D = q_ref.shape[-1]
        q = q_ref[...].astype(jnp.float32).reshape(groups * tq, D)   # (G*tq, D)
        k = k_ref[...].astype(jnp.float32)                           # (tk, D)
        v = v_ref[...].astype(jnp.float32)                           # (tk, D)
        # q @ k^T with the transpose folded into the MXU feed.
        s = jax.lax.dot_general(q, k, (((1,), (1,)), ((), ())),
                                preferred_element_type=jnp.float32)
        s = (s * scale).reshape(groups, tq, tk)

        q_pos = iq * tq + jax.lax.broadcasted_iota(jnp.int32, (tq, tk), 0)
        k_pos = ik * tk + jax.lax.broadcasted_iota(jnp.int32, (tq, tk), 1)
        q_start = ss_ref[...]                                        # (tq, 1)
        # causal AND same-sequence: key index within [seq_start(q), q_pos]
        mask = (k_pos <= q_pos) & (k_pos >= q_start)
        s = jnp.where(mask[None, :, :], s, -1e30)

        m_prev = m_sc[...]
        m_new = jnp.maximum(m_prev, jnp.max(s, axis=-1, keepdims=True))
        alpha = jnp.exp(m_prev - m_new)
        p = jnp.exp(s - m_new)                                       # (G, tq, tk)
        l_sc[...] = alpha * l_sc[...] + jnp.sum(p, axis=-1, keepdims=True)
        pv = jnp.dot(p.reshape(groups * tq, tk), v,
                     preferred_element_type=jnp.float32).reshape(groups, tq, D)
        acc_sc[...] = alpha * acc_sc[...] + pv
        m_sc[...] = m_new

    @pl.when(ik == pl.num_programs(2) - 1)
    def _():
        inv_l = pl.reciprocal(l_sc[...], approx=True)   # EUP slot, near-free
        o_ref[...] = (acc_sc[...] * inv_l).astype(o_ref.dtype)


def flash_attention(q, k, v, seq_start, scale, *, tq_cap=256, tk_cap=256):
    """q: [Hq, T, D]; k, v: [Hkv, T, D]; seq_start: [T, 1] int32 (per-token sequence start)."""
    Hq, T, D = q.shape
    Hkv = k.shape[0]
    G = Hq // Hkv
    tq = _pick_tile(T, tq_cap, 8)
    tk = _pick_tile(T, tk_cap, 8)
    grid = (Hkv, T // tq, T // tk)
    kernel = functools.partial(_flash_attn_kernel, scale=scale, tq=tq, tk=tk, groups=G)
    # TODO(synk): for head_dim < 128 the output last dim is not lane-dense; packing
    # heads into the lane dim would remove masked partial stores (real Qwen2 hd=128 is fine).
    return pl.pallas_call(
        kernel,
        out_shape=jax.ShapeDtypeStruct((Hq, T, D), q.dtype),
        grid_spec=pltpu.PrefetchScalarGridSpec(
            num_scalar_prefetch=0, grid=grid,
            in_specs=[
                # all `G` query heads of one kv head per grid step -> K/V fetched once per kv head
                pl.BlockSpec((G, tq, D), lambda h, iq, ik: (h, iq, 0)),
                pl.BlockSpec((None, tk, D), lambda h, iq, ik: (h, ik, 0)),
                pl.BlockSpec((None, tk, D), lambda h, iq, ik: (h, ik, 0)),
                pl.BlockSpec((tq, 1), lambda h, iq, ik: (iq, 0)),
            ],
            out_specs=pl.BlockSpec((G, tq, D), lambda h, iq, ik: (h, iq, 0)),
            scratch_shapes=[pltpu.VMEM((G, tq, 1), jnp.float32),
                            pltpu.VMEM((G, tq, 1), jnp.float32),
                            pltpu.VMEM((G, tq, D), jnp.float32)]),
        compiler_params=pltpu.CompilerParams(
            dimension_semantics=("parallel", "parallel", "arbitrary")),
    )(q, k, v, seq_start)


# --------------------------------------------------------------------------
# KV-cache scatter (aliased in-place store; writes only the new slots)
# --------------------------------------------------------------------------

def _kv_store_kernel(slots_ref, kc_in, vc_in, k_ref, v_ref, kc_out, vc_out):
    del slots_ref, kc_in, vc_in      # slots drive the output index_map; old cache untouched
    kc_out[...] = k_ref[...]
    vc_out[...] = v_ref[...]


def kv_store(kcache, vcache, k_new, v_new, slots):
    """Scatter k_new/v_new ([T, nkv, hd]) into kcache/vcache ([C, nkv, hd]) at `slots`."""
    T, nkv, hd = k_new.shape

    def cache_map(i, slots_ref):
        return (slots_ref[i], 0, 0)

    def new_map(i, slots_ref):
        return (i, 0, 0)

    blk_cache = pl.BlockSpec((1, nkv, hd), cache_map)
    blk_new = pl.BlockSpec((1, nkv, hd), new_map)
    return pl.pallas_call(
        _kv_store_kernel,
        out_shape=(jax.ShapeDtypeStruct(kcache.shape, kcache.dtype),
                   jax.ShapeDtypeStruct(vcache.shape, vcache.dtype)),
        grid_spec=pltpu.PrefetchScalarGridSpec(
            num_scalar_prefetch=1, grid=(T,),
            in_specs=[blk_cache, blk_cache, blk_new, blk_new],
            out_specs=(blk_cache, blk_cache)),
        # operand indices include the scalar-prefetch arg: slots=0, kcache=1, vcache=2
        input_output_aliases={1: 0, 2: 1},
        compiler_params=pltpu.CompilerParams(dimension_semantics=("arbitrary",)),
    )(slots, kcache, vcache, k_new, v_new)


# ------------------------------ JAX glue -----------------------------------

def get_cos_sin(position_ids, dim, base, dtype):
    """PositionRotaryEmbedding.get_cos_sin -> cos/sin of shape [T, dim//2]."""
    inv_freq = 1.0 / (base ** (jnp.arange(0, dim, 2, dtype=jnp.float32) / dim))
    freqs = position_ids.astype(jnp.float32)[:, None] * inv_freq[None, :]
    return jnp.cos(freqs).astype(dtype), jnp.sin(freqs).astype(dtype)


def apply_rope(x, cos, sin):
    """Neox-style rotate-half RoPE. x: [T, nH, D]; cos/sin: [T, D//2]."""
    # TODO(synk): could be fused into the QKV projection epilogue to save one HBM round trip.
    D = x.shape[-1]
    x1 = x[..., : D // 2]
    x2 = x[..., D // 2:]
    c = cos[:, None, :]
    s = sin[:, None, :]
    return jnp.concatenate([x1 * c - x2 * s, x2 * c + x1 * s], axis=-1)


class Qwen2Config:
    vocab_size = 128
    hidden_size = 64
    num_attention_heads = 4
    num_key_value_heads = 2
    intermediate_size = 128
    num_hidden_layers = 2
    rms_norm_eps = 1e-6
    rope_theta = 10000.0
    hidden_act = "silu"
    sliding_window = None          # TODO(synk): sliding-window mask not implemented
    tie_word_embeddings = True


def init_params(key, cfg):
    """Weights are stored pre-transposed to [in_features, out_features] (a real
    checkpoint would be transposed once at load), biases as [1, out], norm weights
    as [H] -- so no per-forward transpose / dummy-bias overhead."""
    H, nh, nkv = cfg.hidden_size, cfg.num_attention_heads, cfg.num_key_value_heads
    hd = H // nh
    I = cfg.intermediate_size
    dt = jnp.float32

    def nrm(k, shape):
        return jax.random.normal(k, shape, dtype=dt) * 0.02

    keys = jax.random.split(key, 2 + 6 * cfg.num_hidden_layers)
    params = {
        "embed": nrm(keys[0], (cfg.vocab_size, H)),
        "final_norm": jnp.ones((H,), dtype=dt),
        "layers": [],
    }
    ki = 2
    for _ in range(cfg.num_hidden_layers):
        lw = {
            "qkv_w": nrm(keys[ki + 0], (H, (nh + 2 * nkv) * hd)),
            "qkv_b": nrm(keys[ki + 1], (1, (nh + 2 * nkv) * hd)),
            "o_w": nrm(keys[ki + 2], (nh * hd, H)),
            "gate_up_w": nrm(keys[ki + 3], (H, 2 * I)),
            "down_w": nrm(keys[ki + 4], (I, H)),
            "input_ln": jnp.ones((H,), dtype=dt),
            "post_ln": jnp.ones((H,), dtype=dt),
        }
        params["layers"].append(lw)
        ki += 6
    params["lm_head_w"] = (params["embed"].T if cfg.tie_word_embeddings
                           else nrm(keys[1], (H, cfg.vocab_size)))
    return params


def qwen2_forward(params, cfg, input_ids, position_ids, cu_seqlen_prefill,
                  kv_cache, block_tables, slots, seqlen, max_s,
                  prefill_cache_indices=None, lm_head_indices=None,
                  adapter_data=None):
    # TODO(synk): only the prefill (cu_seqlen_prefill is not None) path is
    # implemented; the decode paged_attention path and LoRA adapters are not.
    if cu_seqlen_prefill is None:
        raise NotImplementedError("decode / paged-attention path not implemented")

    H = cfg.hidden_size
    nh = cfg.num_attention_heads
    nkv = cfg.num_key_value_heads
    hd = H // nh
    scale = hd ** -0.5
    eps = cfg.rms_norm_eps

    if prefill_cache_indices is not None:
        slots = slots[prefill_cache_indices]

    T = input_ids.shape[0]
    hidden = jnp.take(params["embed"], input_ids, axis=0)               # [T, H]
    cos, sin = get_cos_sin(position_ids, hd, cfg.rope_theta, hidden.dtype)

    # per-token sequence start index (causal + cross-sequence masking in attention)
    tok = jnp.arange(T, dtype=jnp.int32)
    seg = jnp.searchsorted(cu_seqlen_prefill, tok, side="right") - 1
    seq_start = cu_seqlen_prefill[seg].astype(jnp.int32).reshape(T, 1)

    residual = None
    new_kv_cache = []
    for i, lw in enumerate(params["layers"]):
        # --- attention block ---
        if residual is None:
            residual = hidden
            normed = rmsnorm(hidden, lw["input_ln"], eps)
        else:
            # previous layer's MLP residual add fused into this norm
            normed, residual = add_rmsnorm(hidden, residual, lw["input_ln"], eps)

        qkv = linear(normed, lw["qkv_w"], lw["qkv_b"])                  # [T, (nh+2nkv)*hd]
        q = qkv[:, : nh * hd].reshape(T, nh, hd)
        k = qkv[:, nh * hd:(nh + nkv) * hd].reshape(T, nkv, hd)
        v = qkv[:, (nh + nkv) * hd:].reshape(T, nkv, hd)
        q = apply_rope(q, cos, sin)
        k = apply_rope(k, cos, sin)

        if prefill_cache_indices is not None:
            k_c, v_c = k[prefill_cache_indices], v[prefill_cache_indices]
        else:
            k_c, v_c = k, v
        kcache, vcache = kv_store(kv_cache[i][0], kv_cache[i][1], k_c, v_c, slots)
        new_kv_cache.append((kcache, vcache))

        attn = flash_attention(q.transpose(1, 0, 2),
                               k.transpose(1, 0, 2),
                               v.transpose(1, 0, 2), seq_start, scale)  # [nh, T, hd]
        attn = attn.transpose(1, 0, 2).reshape(T, nh * hd)
        attn_out = linear(attn, lw["o_w"])

        # residual add fused into post-attention RMSNorm
        normed2, residual = add_rmsnorm(attn_out, residual, lw["post_ln"], eps)

        # --- MLP block: gate_up matmul, then SiLU*up fused into down_proj ---
        gu = linear(normed2, lw["gate_up_w"])                           # [T, 2*I]
        hidden = swiglu_linear(gu, lw["down_w"])                        # [T, H] (un-added)

    # final residual add fused into final RMSNorm
    hidden, _ = add_rmsnorm(hidden, residual, params["final_norm"], eps)

    if lm_head_indices is not None:
        hidden = hidden[lm_head_indices]
    logits = linear(hidden, params["lm_head_w"])                        # [*, vocab]
    return logits, new_kv_cache


# ------------------------------- main --------------------------------------

if __name__ == "__main__":
    cfg = Qwen2Config()
    key = jax.random.PRNGKey(0)
    pkey, ikey = jax.random.split(key)
    params = init_params(pkey, cfg)

    T = 8  # one prefill sequence of 8 tokens
    nkv = cfg.num_key_value_heads
    hd = cfg.hidden_size // cfg.num_attention_heads

    input_ids = jax.random.randint(ikey, (T,), 0, cfg.vocab_size, dtype=jnp.int32)
    position_ids = jnp.arange(T, dtype=jnp.int32)
    cu_seqlen_prefill = jnp.array([0, T], dtype=jnp.int32)
    slots = jnp.arange(T, dtype=jnp.int32)
    kv_cache = [(jnp.zeros((16, nkv, hd), jnp.float32),
                 jnp.zeros((16, nkv, hd), jnp.float32))
                for _ in range(cfg.num_hidden_layers)]
    block_tables = jnp.zeros((1, 1), dtype=jnp.int32)
    seqlen = jnp.array([T], dtype=jnp.int32)
    max_s = T
    lm_head_indices = jnp.array([T - 1], dtype=jnp.int32)

    logits, new_kv = qwen2_forward(params, cfg, input_ids, position_ids,
                                   cu_seqlen_prefill, kv_cache, block_tables,
                                   slots, seqlen, max_s,
                                   prefill_cache_indices=None,
                                   lm_head_indices=lm_head_indices)
    jax.block_until_ready(logits)
    assert logits.shape == (1, cfg.vocab_size)
    assert bool(jnp.all(jnp.isfinite(logits)))
    # aliased KV scatter: written slots carry data, untouched slots stay zero
    kc0, _ = new_kv[0]
    assert bool(jnp.all(kc0[T:] == 0.0)) and bool(jnp.any(kc0[:T] != 0.0))
    print("KERNEL_OK")
</pallas_src>

<mosaic_0001>
module attributes {stable_mosaic.version = 11 : i64} {
  func.func @_rmsnorm_kernel(%arg0: i32, %arg1: memref<8x64xf32, #tpu.memory_space<vmem>>, %arg2: memref<1x64xf32, #tpu.memory_space<vmem>>, %arg3: memref<8x64xf32, #tpu.memory_space<vmem>>) attributes {dimension_semantics = [#tpu.dimension_semantics<parallel>], iteration_bounds = array<i64: 1>, scalar_prefetch = 0 : i64, scratch_operands = 0 : i64, tpu.core_type = #tpu.core_type<tc>, window_params = [{transform_indices = @transform_0, window_bounds = array<i64: 8, 64>}, {pipeline_mode = #tpu.pipeline_mode<synchronous>, transform_indices = @transform_1, window_bounds = array<i64: 1, 64>}, {transform_indices = @transform_2, window_bounds = array<i64: 8, 64>}]} {
    %c0 = arith.constant 0 : index
    %c0_0 = arith.constant 0 : index
    %0 = vector.load %arg1[%c0, %c0_0] : memref<8x64xf32, #tpu.memory_space<vmem>>, vector<8x64xf32>
    %1 = arith.mulf %0, %0 : vector<8x64xf32>
    %cst = arith.constant dense<0.000000e+00> : vector<8xf32>
    %2 = vector.multi_reduction <add>, %1, %cst [1] : vector<8x64xf32> to vector<8xf32>
    %3 = vector.shape_cast %2 : vector<8xf32> to vector<8x1xf32>
    %cst_1 = arith.constant 6.400000e+01 : f32
    %4 = vector.broadcast %cst_1 : f32 to vector<8x1xf32>
    %5 = arith.divf %3, %4 : vector<8x1xf32>
    %cst_2 = arith.constant 9.99999997E-7 : f32
    %6 = vector.broadcast %cst_2 : f32 to vector<8x1xf32>
    %7 = arith.addf %5, %6 : vector<8x1xf32>
    %8 = math.rsqrt %7 : vector<8x1xf32>
    %9 = vector.broadcast %8 : vector<8x1xf32> to vector<8x64xf32>
    %10 = arith.mulf %0, %9 : vector<8x64xf32>
    %c0_3 = arith.constant 0 : index
    %c0_4 = arith.constant 0 : index
    %11 = vector.load %arg2[%c0_3, %c0_4] : memref<1x64xf32, #tpu.memory_space<vmem>>, vector<1x64xf32>
    %12 = vector.broadcast %11 : vector<1x64xf32> to vector<8x64xf32>
    %13 = arith.mulf %10, %12 : vector<8x64xf32>
    %c0_5 = arith.constant 0 : index
    %c0_6 = arith.constant 0 : index
    %14 = vector.load %arg3[%c0_5, %c0_6] : memref<8x64xf32, #tpu.memory_space<vmem>>, vector<8x64xf32>
    tpu.vector_store %arg3[%c0_5, %c0_6], %13 {strides = array<i32>} : memref<8x64xf32, #tpu.memory_space<vmem>>, vector<8x64xf32>,
    return
  }
  func.func @transform_0(%arg0: i32) -> (i32, i32) {
    %c0_i32 = arith.constant 0 : i32
    %c0_i32_0 = arith.constant 0 : i32
    return %arg0, %c0_i32 : i32, i32
  }
  func.func @transform_1(%arg0: i32) -> (i32, i32) {
    %c0_i32 = arith.constant 0 : i32
    %c0_i32_0 = arith.constant 0 : i32
    %c0_i32_1 = arith.constant 0 : i32
    return %c0_i32, %c0_i32_0 : i32, i32
  }
  func.func @transform_2(%arg0: i32) -> (i32, i32) {
    %c0_i32 = arith.constant 0 : i32
    %c0_i32_0 = arith.constant 0 : i32
    return %arg0, %c0_i32 : i32, i32
  }
}

</mosaic_0001>

<bundles_post_ra>
// kernel: tpu_custom_call.1
= control target key start
LH: loop header
LB: loop body
LE: loop exit
PB: predicated region body
PF: predicated region fallthrough
CT: control target
= control target key end

     0   :  { %7 = vsyncpa [#allocation3], 0  ;;  %s156_s0 = inlined_call_operand.hbm [shape: f32[8,64], index: 0, kind: input, shape index: {}]   ;;  %s157_s1 = inlined_call_operand.vmem [shape: f32[1,64], index: 1, kind: input, shape index: {}]   ;;  %s158_s2 = inlined_call_operand.hbm [shape: f32[8,64], index: 2, kind: output, shape index: {}]  }
   0x1   :  { %8 = vsyncpa [#allocation4], 0  ;;  %s112_s9 = smov [#allocation2]   ;;  %s64_s13 = scalar_lea.hbm %s156_s0, 128 }
   0x2   :  { %s15_s10 = sshll.u32 %s112_s9, 4  ;;  %p65_p0 = scmp.ne.s32.totalorder %s156_s0, %s64_s13  ;;  %s16_s10 = int_to_ptr.vmem [resolvable:$true] %s15_s10 }
   0x3   :  { %p68_p1 = scmp.lt.u32.totalorder %s64_s13, %s156_s0 }
   0x5   :  { %p70_p2 = pnand %p68_p1, %p65_p0 }
   0x7   :  { %73 = shalt.err (!%p70_p2)
}
   0x8   :  { %s74_s18 = scalar_lea.vmem %s16_s10, 128  ;;  %p79_p4 = scmp.lt.s32.totalorder %s16_s10, %s16_s10 }
   0x9   :  { %p75_p3 = scmp.ne.s32.totalorder %s16_s10, %s74_s18  ;;  %p80_p5 = scmp.lt.s32.totalorder %s74_s18, %s74_s18 }
   0xb   :  { %p81_p6 = por %p80_p5, %p79_p4 }
   0xd   :  { %p82_p7 = pnand %p81_p6, %p75_p3 }
   0xf   :  { %85 = shalt.err (!%p82_p7)
}
  0x10   :  { %18 = dma.hbm_to_vmem [thread:$0]  %s156_s0, 128, %s16_s10, [#allocation3]  }
  0x11   :  { %108 = dma.done.wait [#allocation3], 128  }
  0x12   :  { %109 = vsyncadd [#allocation3], 4294967168  ;;  %v24_v0 = vld [vmem:[#allocation2] sm:$0xff]  ;;  %vm26_vm0 = vcmask 523264   ;;  %s113_s23 = smov [#allocation5]  }
  0x13   :  { %v25_v1 = vmul.f32 %v24_v0, %v24_v0  ;;  %v59_v7 = vld [vmem:[%s157_s1] ss:$0 sm:$0xff]  ;;  %s50_s24 = sshll.u32 %s113_s23, 4  ;;  %s51_s24 = int_to_ptr.vmem [resolvable:$true] %s50_s24 }
  0x14   :  { %s86_s0 = scalar_lea.vmem %s51_s24, 128  ;;  %p91_p9 = scmp.lt.s32.totalorder %s51_s24, %s51_s24 }
  0x15   :  { %v27_v2 = vsel %vm26_vm0, %v25_v1, 0.0  ;;  %p87_p8 = scmp.ne.s32.totalorder %s51_s24, %s86_s0  ;;  %p92_p10 = scmp.lt.s32.totalorder %s86_s0, %s86_s0 }
  0x16   :  { %28 = vadd.xlane.f32.xlu0 %v27_v2 }
  0x17   :  { %p93_p11 = por %p92_p10, %p91_p9 }
  0x19   :  { %p94_p12 = pnand %p93_p11, %p87_p8 }
  0xa3   :  { %v29_v3 = vpop.xlane.xlu0 %28 }
  0xa4   :  { %v31_v4 = vmul.f32 0.015625, %v29_v3 }
  0xa6   :  { %v32_v5 = vadd.f32 1e-06, %v31_v4 }
  0xa8   :  { %62 = vrsqrt.f32 %v32_v5 }
  0xb2   :  { %v63_v6 = vpop.eup %62 }
  0xb3   :  { %v34_v8 = vmul.f32 %v63_v6, %v24_v0 }
  0xb5   :  { %v42_v9 = vmul.f32 %v59_v7, %v34_v8 }
  0xb7   :  { %43 = vst.msk [vmem:[#allocation5] sm:$0xff] %vm26_vm0, %v42_v9 }
  0xb8   :  { %97 = shalt.err (!%p94_p12)
}
  0xb9   :  { %s98_s27 = scalar_lea.hbm %s158_s2, 128 }
  0xba   :  { %p99_p13 = scmp.ne.s32.totalorder %s158_s2, %s98_s27  ;;  %p102_p0 = scmp.lt.u32.totalorder %s98_s27, %s158_s2 }
  0xbc   :  { %p104_p1 = pnand %p102_p0, %p99_p13 }
  0xbe   :  { %107 = shalt.err (!%p104_p1)
}
  0xbf   :  { %53 = dma.vmem_to_hbm [thread:$0]  %s51_s24, 128, %s158_s2, [#allocation4]  }
  0xc0   :  { %110 = dma.done.wait [#allocation4], 128  }
  0xc1   :  { %111 = vsyncadd [#allocation4], 4294967168 }
  0xc2   :  { %57 = vsyncpa [#allocation3], 1 }
  0xc3   :  { %58 = vsyncpa [#allocation4], 1 }

</bundles_post_ra>
